<compile_context>
chip_gen: v7x
topology: tpu7x:2x2x1
jax: 0.10.0
libtpu: 0.0.40
codegen_flags: <defaults>
</compile_context>

<pallas_src>
import functools

import jax
import jax.numpy as jnp
import numpy as np
from jax.experimental import pallas as pl
from jax.experimental.pallas import tpu as pltpu


def _loss_kernel(x_ref, y_ref,
                 bce_ref, tp_ref, fp_ref, fn_ref,
                 bce_acc, tp_acc, p_acc, y_acc,
                 *, hw, tile_hw, accw, n_chunks, n_inner, n_hw_tiles,
                 mask_tail, clamp_tiles, unroll_chunks):
    """Processes one (bc_tile, tile_hw) tile of logits/targets.

    Grid = (hw_outer [parallel], bc_blocks [parallel], hw_inner [arbitrary]).
    Lane-parallel partial sums live in four (bc_tile, accw) f32 VMEM scratch
    accumulators; the cross-lane reduce and the narrow (bc_tile, 1) output
    writes only happen on the last hw_inner step.
    """
    o = pl.program_id(0)
    j = pl.program_id(2)

    @pl.when(j == 0)
    def _():
        bce_acc[...] = jnp.zeros_like(bce_acc)
        tp_acc[...] = jnp.zeros_like(tp_acc)
        p_acc[...] = jnp.zeros_like(p_acc)
        y_acc[...] = jnp.zeros_like(y_acc)

    tile_idx = o * n_inner + j          # global hw-tile index
    tile_base = tile_idx * tile_hw      # global column of lane 0 of this tile

    def accumulate_chunk(xc, yc, col0):
        x = xc.astype(jnp.float32)
        y = yc.astype(jnp.float32)
        # One exp per element shared by the stable BCE softplus and the sigmoid:
        #   e = exp(-|x|); softplus(-|x|) = log1p(e); sigmoid(x) from e.
        e = jnp.exp(-jnp.abs(x))
        softplus = jnp.log1p(e)
        bce = jnp.maximum(x, 0.0) - x * y + softplus      # stable BCEWithLogits
        inv = 1.0 / (1.0 + e)                             # exact divide (tolerance)
        p = jnp.where(x >= 0.0, inv, e * inv)             # sigmoid(x) in [0, 1]
        if mask_tail:
            # Only traced when hw % tile_hw != 0 (rare: tile selection prefers
            # divisors of hw). where-based so OOB garbage/NaN cannot leak in.
            col = col0 + jax.lax.broadcasted_iota(jnp.int32, x.shape, 1)
            valid = col < hw
            bce = jnp.where(valid, bce, 0.0)
            p = jnp.where(valid, p, 0.0)
            y = jnp.where(valid, y, 0.0)
        # Lane-parallel accumulation (pure VALU adds; no per-step XLU reduce,
        # no per-step narrow (bc_tile, 1) read-modify-writes).
        bce_acc[...] += bce
        tp_acc[...] += p * y
        p_acc[...] += p
        y_acc[...] += y

    def accumulate_tile():
        if unroll_chunks:
            for k in range(n_chunks):
                xc = x_ref[:, k * accw:(k + 1) * accw]
                yc = y_ref[:, k * accw:(k + 1) * accw]
                accumulate_chunk(xc, yc, tile_base + k * accw)
        else:
            def body(k, carry):
                off = pl.multiple_of(k * accw, accw)
                xc = x_ref[:, pl.ds(off, accw)]
                yc = y_ref[:, pl.ds(off, accw)]
                accumulate_chunk(xc, yc, tile_base + k * accw)
                return carry
            jax.lax.fori_loop(0, n_chunks, body, 0)

    if clamp_tiles:
        # Uneven hw_outer split: the clamped duplicate tile of the last outer
        # block must not contribute.
        pl.when(tile_idx < n_hw_tiles)(accumulate_tile)
    else:
        accumulate_tile()

    @pl.when(j == n_inner - 1)
    def _():
        tp = jnp.sum(tp_acc[...], axis=-1, keepdims=True)   # (bc_tile, 1)
        sp = jnp.sum(p_acc[...], axis=-1, keepdims=True)
        sy = jnp.sum(y_acc[...], axis=-1, keepdims=True)
        bce = jnp.sum(bce_acc[...], axis=-1, keepdims=True)
        bce_ref[...] = bce
        tp_ref[...] = tp
        fp_ref[...] = sp - tp                                # sum(p * (1 - y))
        fn_ref[...] = sy - tp                                # sum((1 - p) * y)


def _pick_bc_tile(bc, min_mult):
    """Row block: multiple of `min_mult` (sublane packing) or the full dim."""
    if bc % min_mult != 0:
        return bc
    for cand in (512, 256, 128, 64, 32, 16, 8):
        if cand < bc and cand % min_mult == 0 and bc % cand == 0:
            return cand
    return bc


def _hw_budgets():
    """(streamed-input VMEM budget, scoped vmem_limit_bytes), generation-aware."""
    cap = 128 << 20                       # v5e/v6e physical VMEM; safe fallback
    try:
        cap = int(getattr(pltpu.get_tpu_info(), "vmem_capacity_bytes", cap))
    except Exception:
        pass
    # 2 pipeline buffers of both inputs: ~21 MiB on 128 MiB chips (v5e/v6e),
    # ~10.7 MiB on 64 MiB v7x.
    input_budget = int(min(24 << 20, max(8 << 20, cap // 6)))
    vmem_limit = int(min(cap // 2, max(32 << 20, input_budget + (16 << 20))))
    return input_budget, vmem_limit


def _pick_tile_hw(hw, bc_tile, in_bytes_per_elem, input_budget):
    """Largest lane tile (multiple of 128, <= 64K) within the input budget for
    2 pipeline buffers of both streamed inputs; prefers a divisor of hw so the
    tail mask is statically eliminated; full width when hw already fits."""
    bytes_per_col = 2 * in_bytes_per_elem * bc_tile       # 2 buffers, both inputs
    t = (input_budget // max(bytes_per_col, 1)) // 128 * 128
    t = max(128, min(t, 64 * 1024))
    if hw <= t:
        return hw                    # block == full dim: legal, no remainder
    lo = max(512, t // 4)
    c = t
    while c >= lo:                   # largest 128-multiple <= t dividing hw
        if hw % c == 0:
            return c
        c -= 128
    return t                         # fall back: tail masking handles remainder


@functools.partial(jax.jit, static_argnames=("dice_smooth",))
def soft_dice_bce_with_logits_loss(net_output, target, dice_smooth=1.0):
    """Returns (bce_loss, dsc_loss), matching SoftDiceBCEWithLogitsLoss.forward.

    `target` may be any dtype exact for {0, 1} (bool / int8 / bf16 / f32); both
    inputs are streamed in their native dtype and cast to f32 in-kernel.
    """
    assert net_output.shape == target.shape, "target must be one-hot / same shape"
    b, c = net_output.shape[:2]
    hw = int(np.prod(net_output.shape[2:]))
    bc = b * c

    x = net_output.reshape(bc, hw)
    y = target.reshape(bc, hw)

    x_bytes = jnp.dtype(x.dtype).itemsize
    y_bytes = jnp.dtype(y.dtype).itemsize
    # Sublane multiple required by the narrowest streamed dtype (8/16/32).
    min_mult = 32 // min(x_bytes, y_bytes, 4)

    input_budget, vmem_limit = _hw_budgets()
    bc_tile = _pick_bc_tile(bc, min_mult)
    tile_hw = _pick_tile_hw(hw, bc_tile, x_bytes + y_bytes, input_budget)

    n_bc_blocks = bc // bc_tile
    n_hw_tiles = pl.cdiv(hw, tile_hw)
    mask_tail = (hw % tile_hw) != 0

    # v7x has 2 TensorCores: guarantee >= 2 parallel blocks by splitting the hw
    # axis when there is only a single (b, c) row block (the typical case).
    n_outer = 2 if (n_bc_blocks == 1 and n_hw_tiles >= 2) else 1
    n_inner = -(-n_hw_tiles // n_outer)
    clamp_tiles = (n_outer * n_inner) != n_hw_tiles

    # Lane width of the partial-sum accumulators (must divide tile_hw).
    accw = tile_hw
    for cand in (512, 256, 128):
        if tile_hw % cand == 0:
            accw = cand
            break
    n_chunks = tile_hw // accw
    unroll_chunks = n_chunks <= 8

    kernel = functools.partial(
        _loss_kernel, hw=hw, tile_hw=tile_hw, accw=accw, n_chunks=n_chunks,
        n_inner=n_inner, n_hw_tiles=n_hw_tiles, mask_tail=mask_tail,
        clamp_tiles=clamp_tiles, unroll_chunks=unroll_chunks)

    if clamp_tiles:
        def in_idx(o, i, j):
            return (i, jnp.minimum(o * n_inner + j, n_hw_tiles - 1))
    else:
        def in_idx(o, i, j):
            return (i, o * n_inner + j)

    # Per-(outer, b*c) partial sums, flattened to 2-D lane-friendly outputs.
    row_out_spec = pl.BlockSpec((bc_tile, 1),
                                lambda o, i, j: (o * n_bc_blocks + i, 0))
    out_sds = jax.ShapeDtypeStruct((n_outer * bc, 1), jnp.float32)

    bce_parts, tp, fp, fn = pl.pallas_call(
        kernel,
        out_shape=(out_sds, out_sds, out_sds, out_sds),
        grid_spec=pltpu.PrefetchScalarGridSpec(
            num_scalar_prefetch=0,
            grid=(n_outer, n_bc_blocks, n_inner),
            in_specs=[
                pl.BlockSpec((bc_tile, tile_hw), in_idx),
                pl.BlockSpec((bc_tile, tile_hw), in_idx),
            ],
            out_specs=[row_out_spec, row_out_spec, row_out_spec, row_out_spec],
            scratch_shapes=[pltpu.VMEM((bc_tile, accw), jnp.float32)] * 4,
        ),
        compiler_params=pltpu.CompilerParams(
            # Outer-hw and row blocks are independent (megacore-shardable); the
            # inner hw axis is a reduction into the resident outputs/scratch.
            dimension_semantics=("parallel", "parallel", "arbitrary"),
            vmem_limit_bytes=vmem_limit,
        ),
    )(x, y)

    # --- cheap finalization in plain JAX (glue) ---
    n_elems = jnp.float32(bc * hw)
    bce_loss = jnp.sum(bce_parts) / n_elems

    tp = jnp.sum(tp.reshape(n_outer, bc), axis=0)
    fp = jnp.sum(fp.reshape(n_outer, bc), axis=0)
    fn = jnp.sum(fn.reshape(n_outer, bc), axis=0)
    nominator = 2.0 * tp + dice_smooth
    denominator = 2.0 * tp + fp + fn + dice_smooth
    dc = nominator / (denominator + 1e-8)
    dsc_loss = 1.0 - jnp.mean(dc)

    return bce_loss, dsc_loss


def _reference(net_output, target, dice_smooth=1.0):
    """Pure-JAX reference mirroring the PyTorch module, for a sanity check."""
    x = net_output.astype(jnp.float32)
    y = target.astype(jnp.float32)
    bce = jnp.mean(jnp.maximum(x, 0.0) - x * y + jnp.log1p(jnp.exp(-jnp.abs(x))))
    p = jnp.clip(jax.nn.sigmoid(x), 0.0, 1.0)
    axes = tuple(range(2, x.ndim))
    tp = jnp.sum(p * y, axis=axes)
    fp = jnp.sum(p * (1.0 - y), axis=axes)
    fn = jnp.sum((1.0 - p) * y, axis=axes)
    dc = (2.0 * tp + dice_smooth) / (2.0 * tp + fp + fn + dice_smooth + 1e-8)
    return bce, 1.0 - jnp.mean(dc)


if __name__ == "__main__":
    # SoftDiceBCEWithLogitsLoss has no learnable parameters; only inputs needed.
    key = jax.random.PRNGKey(0)
    k_logits, k_target = jax.random.split(key)

    B, C, H, W = 2, 4, 16, 16  # small NCHW shapes
    net_output = jax.random.normal(k_logits, (B, C, H, W), dtype=jnp.float32)
    target = jax.random.bernoulli(k_target, 0.3, (B, C, H, W)).astype(jnp.float32)

    bce_loss, dsc_loss = soft_dice_bce_with_logits_loss(net_output, target)
    jax.block_until_ready((bce_loss, dsc_loss))

    bce_ref, dsc_ref = _reference(net_output, target)
    np.testing.assert_allclose(np.asarray(bce_loss), np.asarray(bce_ref),
                               rtol=1e-5, atol=1e-6)
    np.testing.assert_allclose(np.asarray(dsc_loss), np.asarray(dsc_ref),
                               rtol=1e-5, atol=1e-6)

    print("KERNEL_OK")
</pallas_src>

<mosaic_0001>
module attributes {stable_mosaic.version = 11 : i64} {
  func.func @_loss_kernel(%arg0: i32, %arg1: i32, %arg2: i32, %arg3: memref<8x256xf32, #tpu.memory_space<vmem>>, %arg4: memref<8x256xf32, #tpu.memory_space<vmem>>, %arg5: memref<8x1xf32, #tpu.memory_space<vmem>>, %arg6: memref<8x1xf32, #tpu.memory_space<vmem>>, %arg7: memref<8x1xf32, #tpu.memory_space<vmem>>, %arg8: memref<8x1xf32, #tpu.memory_space<vmem>>, %arg9: memref<8x256xf32, #tpu.memory_space<vmem>>, %arg10: memref<8x256xf32, #tpu.memory_space<vmem>>, %arg11: memref<8x256xf32, #tpu.memory_space<vmem>>, %arg12: memref<8x256xf32, #tpu.memory_space<vmem>>) attributes {dimension_semantics = [#tpu.dimension_semantics<parallel>, #tpu.dimension_semantics<parallel>, #tpu.dimension_semantics<arbitrary>], iteration_bounds = array<i64: 1, 1, 1>, scalar_prefetch = 0 : i64, scratch_operands = 4 : i64, tpu.core_type = #tpu.core_type<tc>, window_params = [{transform_indices = @transform_0, window_bounds = array<i64: 8, 256>}, {transform_indices = @transform_1, window_bounds = array<i64: 8, 256>}, {transform_indices = @transform_2, window_bounds = array<i64: 8, 1>}, {transform_indices = @transform_3, window_bounds = array<i64: 8, 1>}, {transform_indices = @transform_4, window_bounds = array<i64: 8, 1>}, {transform_indices = @transform_5, window_bounds = array<i64: 8, 1>}]} {
    %c0_i32 = arith.constant 0 : i32
    %0 = arith.cmpi eq, %arg2, %c0_i32 : i32
    %1 = arith.extui %0 : i1 to i32
    %c0_i32_0 = arith.constant 0 : i32
    %2 = arith.cmpi ne, %1, %c0_i32_0 : i32
    scf.if %2 {
      %cst_26 = arith.constant 0.000000e+00 : f32
      %39 = vector.broadcast %cst_26 : f32 to vector<8x256xf32>
      %c0_27 = arith.constant 0 : index
      %c0_28 = arith.constant 0 : index
      %40 = vector.load %arg9[%c0_27, %c0_28] : memref<8x256xf32, #tpu.memory_space<vmem>>, vector<8x256xf32>
      tpu.vector_store %arg9[%c0_27, %c0_28], %39 {strides = array<i32>} : memref<8x256xf32, #tpu.memory_space<vmem>>, vector<8x256xf32>,
      %cst_29 = arith.constant 0.000000e+00 : f32
      %41 = vector.broadcast %cst_29 : f32 to vector<8x256xf32>
      %c0_30 = arith.constant 0 : index
      %c0_31 = arith.constant 0 : index
      %42 = vector.load %arg10[%c0_30, %c0_31] : memref<8x256xf32, #tpu.memory_space<vmem>>, vector<8x256xf32>
      tpu.vector_store %arg10[%c0_30, %c0_31], %41 {strides = array<i32>} : memref<8x256xf32, #tpu.memory_space<vmem>>, vector<8x256xf32>,
      %cst_32 = arith.constant 0.000000e+00 : f32
      %43 = vector.broadcast %cst_32 : f32 to vector<8x256xf32>
      %c0_33 = arith.constant 0 : index
      %c0_34 = arith.constant 0 : index
      %44 = vector.load %arg11[%c0_33, %c0_34] : memref<8x256xf32, #tpu.memory_space<vmem>>, vector<8x256xf32>
      tpu.vector_store %arg11[%c0_33, %c0_34], %43 {strides = array<i32>} : memref<8x256xf32, #tpu.memory_space<vmem>>, vector<8x256xf32>,
      %cst_35 = arith.constant 0.000000e+00 : f32
      %45 = vector.broadcast %cst_35 : f32 to vector<8x256xf32>
      %c0_36 = arith.constant 0 : index
      %c0_37 = arith.constant 0 : index
      %46 = vector.load %arg12[%c0_36, %c0_37] : memref<8x256xf32, #tpu.memory_space<vmem>>, vector<8x256xf32>
      tpu.vector_store %arg12[%c0_36, %c0_37], %45 {strides = array<i32>} : memref<8x256xf32, #tpu.memory_space<vmem>>, vector<8x256xf32>,
    } else {
    }
    %c0 = arith.constant 0 : index
    %c0_1 = arith.constant 0 : index
    %3 = vector.load %arg3[%c0, %c0_1] : memref<8x256xf32, #tpu.memory_space<vmem>>, vector<8x256xf32>
    %c0_2 = arith.constant 0 : index
    %c0_3 = arith.constant 0 : index
    %4 = vector.load %arg4[%c0_2, %c0_3] : memref<8x256xf32, #tpu.memory_space<vmem>>, vector<8x256xf32>
    %5 = math.absf %3 : vector<8x256xf32>
    %cst = arith.constant 0.000000e+00 : f32
    %6 = vector.broadcast %cst : f32 to vector<8x256xf32>
    %7 = arith.subf %6, %5 : vector<8x256xf32>
    %8 = math.exp %7 : vector<8x256xf32>
    %9 = math.log1p %8 : vector<8x256xf32>
    %cst_4 = arith.constant 0.000000e+00 : f32
    %10 = vector.broadcast %cst_4 : f32 to vector<8x256xf32>
    %11 = arith.maximumf %3, %10 : vector<8x256xf32>
    %12 = arith.mulf %3, %4 : vector<8x256xf32>
    %13 = arith.subf %11, %12 : vector<8x256xf32>
    %14 = arith.addf %13, %9 : vector<8x256xf32>
    %cst_5 = arith.constant 1.000000e+00 : f32
    %15 = vector.broadcast %cst_5 : f32 to vector<8x256xf32>
    %16 = arith.addf %15, %8 : vector<8x256xf32>
    %cst_6 = arith.constant 1.000000e+00 : f32
    %17 = vector.broadcast %cst_6 : f32 to vector<8x256xf32>
    %18 = arith.divf %17, %16 : vector<8x256xf32>
    %cst_7 = arith.constant 0.000000e+00 : f32
    %19 = vector.broadcast %cst_7 : f32 to vector<8x256xf32>
    %20 = arith.cmpf oge, %3, %19 : vector<8x256xf32>
    %21 = arith.mulf %8, %18 : vector<8x256xf32>
    %22 = arith.select %20, %18, %21 : vector<8x256xi1>, vector<8x256xf32>
    %c0_8 = arith.constant 0 : index
    %c0_9 = arith.constant 0 : index
    %23 = vector.load %arg9[%c0_8, %c0_9] : memref<8x256xf32, #tpu.memory_space<vmem>>, vector<8x256xf32>
    %24 = arith.addf %23, %14 : vector<8x256xf32>
    %c0_10 = arith.constant 0 : index
    %c0_11 = arith.constant 0 : index
    %25 = vector.load %arg9[%c0_10, %c0_11] : memref<8x256xf32, #tpu.memory_space<vmem>>, vector<8x256xf32>
    tpu.vector_store %arg9[%c0_10, %c0_11], %24 {strides = array<i32>} : memref<8x256xf32, #tpu.memory_space<vmem>>, vector<8x256xf32>,
    %c0_12 = arith.constant 0 : index
    %c0_13 = arith.constant 0 : index
    %26 = vector.load %arg10[%c0_12, %c0_13] : memref<8x256xf32, #tpu.memory_space<vmem>>, vector<8x256xf32>
    %27 = arith.mulf %22, %4 : vector<8x256xf32>
    %28 = arith.addf %26, %27 : vector<8x256xf32>
    %c0_14 = arith.constant 0 : index
    %c0_15 = arith.constant 0 : index
    %29 = vector.load %arg10[%c0_14, %c0_15] : memref<8x256xf32, #tpu.memory_space<vmem>>, vector<8x256xf32>
    tpu.vector_store %arg10[%c0_14, %c0_15], %28 {strides = array<i32>} : memref<8x256xf32, #tpu.memory_space<vmem>>, vector<8x256xf32>,
    %c0_16 = arith.constant 0 : index
    %c0_17 = arith.constant 0 : index
    %30 = vector.load %arg11[%c0_16, %c0_17] : memref<8x256xf32, #tpu.memory_space<vmem>>, vector<8x256xf32>
    %31 = arith.addf %30, %22 : vector<8x256xf32>
    %c0_18 = arith.constant 0 : index
    %c0_19 = arith.constant 0 : index
    %32 = vector.load %arg11[%c0_18, %c0_19] : memref<8x256xf32, #tpu.memory_space<vmem>>, vector<8x256xf32>
    tpu.vector_store %arg11[%c0_18, %c0_19], %31 {strides = array<i32>} : memref<8x256xf32, #tpu.memory_space<vmem>>, vector<8x256xf32>,
    %c0_20 = arith.constant 0 : index
    %c0_21 = arith.constant 0 : index
    %33 = vector.load %arg12[%c0_20, %c0_21] : memref<8x256xf32, #tpu.memory_space<vmem>>, vector<8x256xf32>
    %34 = arith.addf %33, %4 : vector<8x256xf32>
    %c0_22 = arith.constant 0 : index
    %c0_23 = arith.constant 0 : index
    %35 = vector.load %arg12[%c0_22, %c0_23] : memref<8x256xf32, #tpu.memory_space<vmem>>, vector<8x256xf32>
    tpu.vector_store %arg12[%c0_22, %c0_23], %34 {strides = array<i32>} : memref<8x256xf32, #tpu.memory_space<vmem>>, vector<8x256xf32>,
    %c0_i32_24 = arith.constant 0 : i32
    %36 = arith.cmpi eq, %arg2, %c0_i32_24 : i32
    %37 = arith.extui %36 : i1 to i32
    %c0_i32_25 = arith.constant 0 : i32
    %38 = arith.cmpi ne, %37, %c0_i32_25 : i32
    scf.if %38 {
      %c0_26 = arith.constant 0 : index
      %c0_27 = arith.constant 0 : index
      %39 = vector.load %arg10[%c0_26, %c0_27] : memref<8x256xf32, #tpu.memory_space<vmem>>, vector<8x256xf32>
      %cst_28 = arith.constant dense<0.000000e+00> : vector<8xf32>
      %40 = vector.multi_reduction <add>, %39, %cst_28 [1] : vector<8x256xf32> to vector<8xf32>
      %41 = vector.shape_cast %40 : vector<8xf32> to vector<8x1xf32>
      %c0_29 = arith.constant 0 : index
      %c0_30 = arith.constant 0 : index
      %42 = vector.load %arg11[%c0_29, %c0_30] : memref<8x256xf32, #tpu.memory_space<vmem>>, vector<8x256xf32>
      %cst_31 = arith.constant dense<0.000000e+00> : vector<8xf32>
      %43 = vector.multi_reduction <add>, %42, %cst_31 [1] : vector<8x256xf32> to vector<8xf32>
      %44 = vector.shape_cast %43 : vector<8xf32> to vector<8x1xf32>
      %c0_32 = arith.constant 0 : index
      %c0_33 = arith.constant 0 : index
      %45 = vector.load %arg12[%c0_32, %c0_33] : memref<8x256xf32, #tpu.memory_space<vmem>>, vector<8x256xf32>
      %cst_34 = arith.constant dense<0.000000e+00> : vector<8xf32>
      %46 = vector.multi_reduction <add>, %45, %cst_34 [1] : vector<8x256xf32> to vector<8xf32>
      %47 = vector.shape_cast %46 : vector<8xf32> to vector<8x1xf32>
      %c0_35 = arith.constant 0 : index
      %c0_36 = arith.constant 0 : index
      %48 = vector.load %arg9[%c0_35, %c0_36] : memref<8x256xf32, #tpu.memory_space<vmem>>, vector<8x256xf32>
      %cst_37 = arith.constant dense<0.000000e+00> : vector<8xf32>
      %49 = vector.multi_reduction <add>, %48, %cst_37 [1] : vector<8x256xf32> to vector<8xf32>
      %50 = vector.shape_cast %49 : vector<8xf32> to vector<8x1xf32>
      %c0_38 = arith.constant 0 : index
      %c0_39 = arith.constant 0 : index
      %51 = vector.load %arg5[%c0_38, %c0_39] : memref<8x1xf32, #tpu.memory_space<vmem>>, vector<8x1xf32>
      tpu.vector_store %arg5[%c0_38, %c0_39], %50 {strides = array<i32>} : memref<8x1xf32, #tpu.memory_space<vmem>>, vector<8x1xf32>,
      %c0_40 = arith.constant 0 : index
      %c0_41 = arith.constant 0 : index
      %52 = vector.load %arg6[%c0_40, %c0_41] : memref<8x1xf32, #tpu.memory_space<vmem>>, vector<8x1xf32>
      tpu.vector_store %arg6[%c0_40, %c0_41], %41 {strides = array<i32>} : memref<8x1xf32, #tpu.memory_space<vmem>>, vector<8x1xf32>,
      %53 = arith.subf %44, %41 : vector<8x1xf32>
      %c0_42 = arith.constant 0 : index
      %c0_43 = arith.constant 0 : index
      %54 = vector.load %arg7[%c0_42, %c0_43] : memref<8x1xf32, #tpu.memory_space<vmem>>, vector<8x1xf32>
      tpu.vector_store %arg7[%c0_42, %c0_43], %53 {strides = array<i32>} : memref<8x1xf32, #tpu.memory_space<vmem>>, vector<8x1xf32>,
      %55 = arith.subf %47, %41 : vector<8x1xf32>
      %c0_44 = arith.constant 0 : index
      %c0_45 = arith.constant 0 : index
      %56 = vector.load %arg8[%c0_44, %c0_45] : memref<8x1xf32, #tpu.memory_space<vmem>>, vector<8x1xf32>
      tpu.vector_store %arg8[%c0_44, %c0_45], %55 {strides = array<i32>} : memref<8x1xf32, #tpu.memory_space<vmem>>, vector<8x1xf32>,
    } else {
    }
    return
  }
  func.func @transform_0(%arg0: i32, %arg1: i32, %arg2: i32) -> (i32, i32) {
    %c1_i32 = arith.constant 1 : i32
    %0 = arith.muli %arg0, %c1_i32 : i32
    %1 = arith.addi %0, %arg2 : i32
    %c0_i32 = arith.constant 0 : i32
    return %arg1, %1 : i32, i32
  }
  func.func @transform_1(%arg0: i32, %arg1: i32, %arg2: i32) -> (i32, i32) {
    %c1_i32 = arith.constant 1 : i32
    %0 = arith.muli %arg0, %c1_i32 : i32
    %1 = arith.addi %0, %arg2 : i32
    %c0_i32 = arith.constant 0 : i32
    return %arg1, %1 : i32, i32
  }
  func.func @transform_2(%arg0: i32, %arg1: i32, %arg2: i32) -> (i32, i32) {
    %c1_i32 = arith.constant 1 : i32
    %0 = arith.muli %arg0, %c1_i32 : i32
    %1 = arith.addi %0, %arg1 : i32
    %c0_i32 = arith.constant 0 : i32
    %c0_i32_0 = arith.constant 0 : i32
    return %1, %c0_i32 : i32, i32
  }
  func.func @transform_3(%arg0: i32, %arg1: i32, %arg2: i32) -> (i32, i32) {
    %c1_i32 = arith.constant 1 : i32
    %0 = arith.muli %arg0, %c1_i32 : i32
    %1 = arith.addi %0, %arg1 : i32
    %c0_i32 = arith.constant 0 : i32
    %c0_i32_0 = arith.constant 0 : i32
    return %1, %c0_i32 : i32, i32
  }
  func.func @transform_4(%arg0: i32, %arg1: i32, %arg2: i32) -> (i32, i32) {
    %c1_i32 = arith.constant 1 : i32
    %0 = arith.muli %arg0, %c1_i32 : i32
    %1 = arith.addi %0, %arg1 : i32
    %c0_i32 = arith.constant 0 : i32
    %c0_i32_0 = arith.constant 0 : i32
    return %1, %c0_i32 : i32, i32
  }
  func.func @transform_5(%arg0: i32, %arg1: i32, %arg2: i32) -> (i32, i32) {
    %c1_i32 = arith.constant 1 : i32
    %0 = arith.muli %arg0, %c1_i32 : i32
    %1 = arith.addi %0, %arg1 : i32
    %c0_i32 = arith.constant 0 : i32
    %c0_i32_0 = arith.constant 0 : i32
    return %1, %c0_i32 : i32, i32
  }
}

</mosaic_0001>

<bundles_post_ra>
// kernel: soft_dice_bce_with_logits_loss.1
= control target key start
LH: loop header
LB: loop body
LE: loop exit
PB: predicated region body
PF: predicated region fallthrough
CT: control target
= control target key end

     0   :  { %vm214_vm4 = vcmask 7168   ;;  %s391_s1 = inlined_call_operand.vmem [shape: f32[8,256], index: 1, kind: input, shape index: {}]   ;;  %s392_s0 = inlined_call_operand.vmem [shape: f32[8,256], index: 0, kind: input, shape index: {}]   ;;  %s393_s3 = inlined_call_operand.vmem [shape: f32[8,1], index: 3, kind: output, shape index: {1}]   ;;  %s394_s5 = inlined_call_operand.vmem [shape: f32[8,1], index: 5, kind: output, shape index: {3}]   ;;  %s395_s2 = inlined_call_operand.vmem [shape: f32[8,1], index: 2, kind: output, shape index: {0}]   ;;  %s396_s4 = inlined_call_operand.vmem [shape: f32[8,1], index: 4, kind: output, shape index: {2}]  }
   0x1   :  { %v117_v0 = vld [vmem:[%s391_s1] sm:$0xff]  ;;  %v118_v1 = vld [vmem:[%s391_s1 + $0x8] sm:$0xff] }
   0x2   :  { %v115_v2 = vld [vmem:[%s392_s0] sm:$0xff]  ;;  %v206_v3 = vadd.f32 %v118_v1, %v117_v0  ;;  %v116_v4 = vld [vmem:[%s392_s0 + $0x8] sm:$0xff] }
   0x3   :  { %v119_v5 = vand.u32 2147483647, %v115_v2  ;;  %v120_v6 = vand.u32 2147483647, %v116_v4  ;;  %v147_v18 = vmul.f32 %v117_v0, %v115_v2  ;;  %v145_v21 = vmax.f32 %v115_v2, 0.0 }
   0x4   :  { %207 = vadd.xlane.f32.xlu1 %v206_v3  ;;  %v148_v22 = vmul.f32 %v118_v1, %v116_v4  ;;  %v146_v24 = vmax.f32 %v116_v4, 0.0  ;;  %vm159_vm0 = vcmp.ge.f32.partialorder %v115_v2, 0.0  ;;  %vm160_vm1 = vcmp.ge.f32.partialorder %v116_v4, 0.0 }
   0x5   :  { %v121_v7 = vsub.f32 0.0, %v119_v5  ;;  %v122_v8 = vsub.f32 0.0, %v120_v6  ;;  %v149_v32 = vsub.f32 %v145_v21, %v147_v18 }
   0x6   :  { %v150_v36 = vsub.f32 %v146_v24, %v148_v22 }
   0x7   :  { %v123_v9 = vmul.f32 1.442695, %v121_v7  ;;  %v125_v10 = vmul.f32 1.442695, %v122_v8 }
   0x9   :  { %325 = vpow2.f32 %v123_v9 }
   0xa   :  { %327 = vpow2.f32 %v125_v10 }
  0x13   :  { %v326_v11 = vpop.eup %325 }
  0x14   :  { %v328_v12 = vpop.eup %327  ;;  %v127_v13 = vadd.f32 1.0, %v326_v11  ;;  %v130_v15 = vmul.f32 -0.5, %v326_v11  ;;  %v133_v19 = vand.u32 2147483647, %v326_v11 }
  0x15   :  { %v136_v14 = vadd.f32 1.0, %v328_v12  ;;  %v139_v16 = vmul.f32 -0.5, %v328_v12  ;;  %v142_v23 = vand.u32 2147483647, %v328_v12 }
  0x16   :  { %329 = vrcp.f32 %v127_v13  ;;  %v131_v17 = vadd.f32 1.0, %v130_v15  ;;  %vm134_vm2 = vcmp.lt.f32.partialorder %v133_v19, 0.0004427343 }
  0x17   :  { %331 = vrcp.f32 %v136_v14  ;;  %v140_v20 = vadd.f32 1.0, %v139_v16  ;;  %vm143_vm3 = vcmp.lt.f32.partialorder %v142_v23, 0.0004427343 }
  0x18   :  { %333 = vlog2.f32 %v127_v13  ;;  %v132_v28 = vmul.f32 %v326_v11, %v131_v17 }
  0x19   :  { %335 = vlog2.f32 %v136_v14  ;;  %v141_v31 = vmul.f32 %v328_v12, %v140_v20 }
  0x20   :  { %v330_v25 = vpop.eup %329 }
  0x21   :  { %v332_v26 = vpop.eup %331  ;;  %v161_v27 = vmul.f32 %v330_v25, %v326_v11 }
  0x22   :  { %v334_v29 = vpop.eup %333  ;;  %v162_v30 = vmul.f32 %v332_v26, %v328_v12 }
  0x23   :  { %v336_v33 = vpop.eup %335  ;;  %v163_v34 = vsel %vm159_vm0, %v330_v25, %v161_v27  ;;  %v129_v35 = vmul.f32 0.6931472, %v334_v29 }
  0x24   :  { %v164_v37 = vsel %vm160_vm1, %v332_v26, %v162_v30  ;;  %v173_v38 = vmul.f32 %v163_v34, %v117_v0  ;;  %v138_v39 = vmul.f32 0.6931472, %v336_v33 }
  0x25   :  { %v174_v40 = vmul.f32 %v164_v37, %v118_v1  ;;  %v135_v41 = vsel %vm134_vm2, %v132_v28, %v129_v35  ;;  %v201_v46 = vadd.f32 %v164_v37, %v163_v34 }
  0x26   :  { %v144_v42 = vsel %vm143_vm3, %v141_v31, %v138_v39  ;;  %v151_v43 = vadd.f32 %v149_v32, %v135_v41 }
  0x27   :  { %v196_v44 = vadd.f32 %v174_v40, %v173_v38  ;;  %v152_v45 = vadd.f32 %v150_v36, %v144_v42 }
  0x29   :  { %197 = vadd.xlane.f32.xlu0 %v196_v44  ;;  %v211_v47 = vadd.f32 %v152_v45, %v151_v43 }
  0x2b   :  { %212 = vadd.xlane.f32.xlu1 %v211_v47 }
  0x2d   :  { %202 = vadd.xlane.f32.xlu0 %v201_v46 }
  0x91   :  { %v208_v48 = vpop.xlane.xlu1 %207 }
  0xb6   :  { %v198_v49 = vpop.xlane.xlu0 %197 }
  0xb7   :  { %216 = vst.msk [vmem:[%s393_s3] sm:$0xff] %vm214_vm4, %v198_v49  ;;  %v219_v50 = vsub.f32 %v208_v48, %v198_v49 }
  0xb8   :  { %v213_v51 = vpop.xlane.xlu1 %212 }
  0xb9   :  { %220 = vst.msk [vmem:[%s394_s5] sm:$0xff] %vm214_vm4, %v219_v50  ;;  %215 = vst.msk [vmem:[%s395_s2] sm:$0xff] %vm214_vm4, %v213_v51 }
  0xba   :  { %v203_v52 = vpop.xlane.xlu0 %202 }
  0xbb   :  { %v217_v53 = vsub.f32 %v203_v52, %v198_v49 }
  0xbd   :  { %218 = vst.msk [vmem:[%s396_s4] sm:$0xff] %vm214_vm4, %v217_v53 }

</bundles_post_ra>
